<compile_context>
chip_gen: v6e
topology: v6e:2x2x1
jax: 0.10.0
libtpu: 0.0.40
codegen_flags: <defaults>
</compile_context>

<pallas_src>
import functools
import math

import jax
import jax.numpy as jnp
from jax import lax
from jax.experimental import pallas as pl
from jax.experimental.pallas import tpu as pltpu

LANE = 128
SUBLANE = 8


def _round_up(x, n):
    return ((x + n - 1) // n) * n


# ------------------------------ fused kernel --------------------------------

def _performer_kernel(q_ref, k_ref, v_ref, w_ref, bias_ref, pw_ref, o_ref,
                      qp_acc, ksum_acc, kptv_acc, *,
                      tk_tile, true_tk, mask_k, eps, mxu_dtype):
    """Grid = (batch, q_tile, k_tile); k_tile is the innermost reduction axis.

    Per (b, qi): kt==0 computes the q-side random-feature map once and zeroes
    the accumulators; every kt step streams one (TK, E) k/v tile, accumulating
    sum_i kp[i] and kp^T @ v in f32 VMEM scratch; the last kt step normalizes,
    applies the fused output projection and stores one lane-dense (TQ, E) block.
    """
    kt = pl.program_id(2)

    w = w_ref[...].astype(mxu_dtype)          # (m_pad, E_pad)
    bias = bias_ref[...]                      # (1, m_pad): 0.5*ln(m) | 1e30 (pad)
    contract_last = (((1,), (1,)), ((), ()))  # x @ y.T without materializing y.T

    # ---- init: q-side feature map (reused across all kt) + zero accumulators
    @pl.when(kt == 0)
    def _():
        q = q_ref[0]                                              # (TQ, E_pad) f32
        qd = 0.5 * jnp.sum(q * q, axis=-1, keepdims=True)         # (TQ, 1)
        qw = lax.dot_general(q.astype(mxu_dtype), w, contract_last,
                             preferred_element_type=jnp.float32)  # (TQ, m_pad)
        # exp(q.w^T - |q|^2/2 - 0.5*ln m): the 1/sqrt(m) scale is folded into
        # the exponent (exact); padded feature columns have bias=1e30 -> exp=0.
        qp_acc[...] = jnp.exp(qw - qd - bias)
        ksum_acc[...] = jnp.zeros_like(ksum_acc)
        kptv_acc[...] = jnp.zeros_like(kptv_acc)

    # ---- stream one k/v tile: accumulate kp-sum and kp^T @ v ----
    k = k_ref[0]                                                  # (TK, E_pad) f32
    v = v_ref[0]
    kd = 0.5 * jnp.sum(k * k, axis=-1, keepdims=True)             # (TK, 1)
    if mask_k:
        # zero-padded k rows would otherwise contribute exp(-0.5*ln m) != 0.
        row = kt * tk_tile + lax.broadcasted_iota(jnp.int32, (tk_tile, 1), 0)
        kd = kd + jnp.where(row < true_tk, jnp.float32(0.0), jnp.float32(1e30))
    kw = lax.dot_general(k.astype(mxu_dtype), w, contract_last,
                         preferred_element_type=jnp.float32)      # (TK, m_pad)
    kp = jnp.exp(kw - kd - bias)                                  # (TK, m_pad) f32
    ksum_acc[...] += jnp.sum(kp, axis=0, keepdims=True)           # (1, m_pad)
    kptv_acc[...] += lax.dot_general(                             # (m_pad, E_pad)
        kp.astype(mxu_dtype), v.astype(mxu_dtype),
        (((0,), (0,)), ((), ())), preferred_element_type=jnp.float32)

    # ---- finalize: normalize + fused output projection ----
    @pl.when(kt == pl.num_programs(2) - 1)
    def _():
        qp = qp_acc[...]                                          # (TQ, m_pad) f32
        # D = qp . sum_i kp[i]  -> VPU multiply + lane reduce (MXU stays free)
        d = jnp.sum(qp * ksum_acc[...], axis=-1, keepdims=True)   # (TQ, 1)
        y = jnp.dot(qp.astype(mxu_dtype), kptv_acc[...].astype(mxu_dtype),
                    preferred_element_type=jnp.float32)           # (TQ, E_pad)
        y = y * pl.reciprocal(d + jnp.float32(eps), approx=True)
        o_ref[0] = jnp.dot(y.astype(mxu_dtype), pw_ref[...].astype(mxu_dtype),
                           preferred_element_type=jnp.float32).astype(o_ref.dtype)


# ----------------------------- tiling selection ------------------------------

def _pick_tiling(e_pad, m_pad):
    """Tile rows + VMEM limit derived from the chip's VMEM capacity
    (v5e/v6e: 128 MiB -> big tiles; v7x: 64 MiB per TensorCore -> smaller)."""
    try:
        cap = int(pltpu.get_tpu_info().vmem_capacity_bytes)
    except Exception:
        cap = 64 * 1024 * 1024          # conservative fallback (v7x per-TC)
    limit = int(min(cap * 3 // 4, 100 * 1024 * 1024))
    # fixed VMEM: double-buffered w/pw/bias blocks + f32 kptv/ksum scratch
    fixed = 4 * (2 * (m_pad * e_pad + e_pad * e_pad + m_pad)
                 + m_pad * e_pad + m_pad)
    # per tile-row: double-buffered q/k/v/out blocks + one qp-scratch row
    per_row = 4 * (2 * 4 * e_pad + m_pad)
    budget = max(limit - fixed, 1 << 20)
    tile = (budget // (2 * per_row)) // LANE * LANE     # keep ~50% headroom
    tile = int(max(LANE, min(1024, tile)))
    return tile, limit


# --------------------------------- wrapper -----------------------------------

def block_performer_forward(q, k, v, w, pw, *, eps=1e-8,
                            mxu_dtype=jnp.bfloat16,
                            tq_tile=None, tk_tile=None):
    """q: (B,Tq,E); k,v: (B,Tk,E); w: (m,E); pw: (E,E) -> (B,Tq,E) float32."""
    B, Tq, E = q.shape
    Tk = k.shape[1]
    m = w.shape[0]

    f32 = jnp.float32
    q, k, v = q.astype(f32), k.astype(f32), v.astype(f32)
    w, pw = w.astype(f32), pw.astype(f32)

    # Lane-pad the feature (m) and channel (E) axes to multiples of 128 so the
    # MXU N-dim is full and the output stores are lane-dense (unmasked vst).
    e_pad = _round_up(E, LANE)
    m_pad = _round_up(m, LANE)

    tile, vmem_limit = _pick_tiling(e_pad, m_pad)
    if tq_tile is None:
        tq_tile = tile
    if tk_tile is None:
        tk_tile = tile
    tq_tile = min(tq_tile, _round_up(Tq, SUBLANE))
    tk_tile = min(tk_tile, _round_up(Tk, SUBLANE))
    tq_pad = _round_up(Tq, tq_tile)
    tk_pad = _round_up(Tk, tk_tile)

    q_p = jnp.pad(q, ((0, 0), (0, tq_pad - Tq), (0, e_pad - E)))
    k_p = jnp.pad(k, ((0, 0), (0, tk_pad - Tk), (0, e_pad - E)))
    v_p = jnp.pad(v, ((0, 0), (0, tk_pad - Tk), (0, e_pad - E)))
    w_p = jnp.pad(w, ((0, m_pad - m), (0, e_pad - E)))
    pw_p = jnp.pad(pw, ((0, e_pad - E), (0, e_pad - E)))
    # 0.5*ln(m) folds the exact 1/sqrt(m) scaling into the exponent; 1e30 on
    # padded feature columns makes exp(...) == 0 there (required: exp of a
    # zero-padded column is NOT zero).
    bias = jnp.where(jnp.arange(m_pad) < m,
                     f32(0.5 * math.log(m)), f32(1e30))[None, :]

    grid = (B, tq_pad // tq_tile, tk_pad // tk_tile)
    kernel = functools.partial(
        _performer_kernel,
        tk_tile=tk_tile, true_tk=Tk, mask_k=(tk_pad != Tk),
        eps=eps, mxu_dtype=mxu_dtype)

    # TODO(synk): the constant w/pw/bias blocks could drop to a single buffer
    # (pipeline_mode) to shave a few MiB of VMEM at very large d_model.
    out = pl.pallas_call(
        kernel,
        out_shape=jax.ShapeDtypeStruct((B, tq_pad, e_pad), f32),
        grid=grid,
        in_specs=[
            pl.BlockSpec((1, tq_tile, e_pad), lambda b, qi, kt: (b, qi, 0)),
            pl.BlockSpec((1, tk_tile, e_pad), lambda b, qi, kt: (b, kt, 0)),
            pl.BlockSpec((1, tk_tile, e_pad), lambda b, qi, kt: (b, kt, 0)),
            pl.BlockSpec((m_pad, e_pad), lambda b, qi, kt: (0, 0)),
            pl.BlockSpec((1, m_pad), lambda b, qi, kt: (0, 0)),
            pl.BlockSpec((e_pad, e_pad), lambda b, qi, kt: (0, 0)),
        ],
        out_specs=pl.BlockSpec((1, tq_tile, e_pad), lambda b, qi, kt: (b, qi, 0)),
        scratch_shapes=[
            pltpu.VMEM((tq_tile, m_pad), f32),   # qp: q-side feature map
            pltpu.VMEM((1, m_pad), f32),         # sum_i kp[i]
            pltpu.VMEM((m_pad, e_pad), f32),     # kp^T @ v
        ],
        compiler_params=pltpu.CompilerParams(
            dimension_semantics=("parallel", "parallel", "arbitrary"),
            vmem_limit_bytes=vmem_limit,
        ),
    )(q_p, k_p, v_p, w_p, bias, pw_p)

    return out[:, :Tq, :E]


# ------------------------------- module port --------------------------------

class BlockPerformer:
    """JAX/Pallas port of Block_performer (proj has no bias; w is frozen)."""

    def __init__(self, d_model, n_head=1, kernel_ratio=0.5, *, key):
        self.emb = d_model
        self.n_head = n_head                 # stored but unused, as in reference
        self.epsilon = 1e-8
        self.m = int(self.emb * kernel_ratio)
        assert self.m <= self.emb, "kernel_ratio > 1 not supported here"
        k_w, k_proj = jax.random.split(key)

        # nn.init.orthogonal_(randn(m, emb)) * sqrt(m): orthonormal rows * sqrt(m)
        a = jax.random.normal(k_w, (self.emb, self.m), jnp.float32)
        q_mat, _ = jnp.linalg.qr(a)                                   # (emb, m)
        self.w = (q_mat.T * math.sqrt(self.m)).astype(jnp.float32)    # (m, emb)

        # nn.Linear(emb, emb, bias=False), stored transposed as (in, out)
        bound = 1.0 / math.sqrt(self.emb)
        self.w_proj = jax.random.uniform(k_proj, (self.emb, self.emb),
                                         jnp.float32, -bound, bound)

    def __call__(self, q, k, v, mask=None, *, mxu_dtype=jnp.bfloat16):
        # `mask` is accepted but unused — matches the PyTorch forward exactly.
        return block_performer_forward(q, k, v, self.w, self.w_proj,
                                       eps=self.epsilon, mxu_dtype=mxu_dtype)


# ---------------------------- pure-JAX reference ----------------------------

def reference(mod, q, k, v):
    m, w, eps = mod.m, mod.w, mod.epsilon

    def prm_exp(x):
        xd = jnp.sum(x * x, axis=-1, keepdims=True) / 2.0
        wtx = jnp.einsum('bti,mi->btm', x, w)
        return jnp.exp(wtx - xd) / math.sqrt(m)

    kp, qp = prm_exp(k), prm_exp(q)
    D = jnp.einsum('bti,bi->bt', qp, kp.sum(axis=1))[..., None]       # (B, Tq, 1)
    kptv = jnp.einsum('bin,bim->bnm', v, kp)                          # (B, E, m)
    y = jnp.einsum('bti,bni->btn', qp, kptv) / (D + eps)              # (B, Tq, E)
    return y @ mod.w_proj


# ------------------------------------ main -----------------------------------

if __name__ == "__main__":
    key = jax.random.PRNGKey(0)
    kq, kk, kv, kparam = jax.random.split(key, 4)

    B, Tq, Tk, d_model = 2, 8, 16, 32
    q = jax.random.normal(kq, (B, Tq, d_model), jnp.float32)
    k = jax.random.normal(kk, (B, Tk, d_model), jnp.float32)
    v = jax.random.normal(kv, (B, Tk, d_model), jnp.float32)

    mod = BlockPerformer(d_model, n_head=1, kernel_ratio=0.5, key=kparam)
    y_ref = reference(mod, q, k, v)

    # f32-MXU mode: tight check of the kernel math against the PyTorch formula.
    y_f32 = mod(q, k, v, mask=None, mxu_dtype=jnp.float32)
    jax.block_until_ready(y_f32)
    assert y_f32.shape == (B, Tq, d_model)
    assert jnp.allclose(y_f32, y_ref, atol=3e-3, rtol=3e-3), "f32 kernel mismatch"

    # Default bf16-MXU mode (the performance configuration): bf16 matmul
    # operands + f32 accumulation -> compare at bf16-level tolerance.
    y = mod(q, k, v, mask=None)
    jax.block_until_ready(y)
    assert y.shape == (B, Tq, d_model)
    assert jnp.allclose(y, y_ref, atol=5e-2, rtol=5e-2), "bf16 kernel mismatch"

    print("KERNEL_OK")
</pallas_src>

<mosaic_0001>
module attributes {stable_mosaic.version = 11 : i64} {
  func.func @_performer_kernel(%arg0: i32, %arg1: i32, %arg2: i32, %arg3: memref<1x8x128xf32, #tpu.memory_space<vmem>>, %arg4: memref<1x16x128xf32, #tpu.memory_space<vmem>>, %arg5: memref<1x16x128xf32, #tpu.memory_space<vmem>>, %arg6: memref<128x128xf32, #tpu.memory_space<vmem>>, %arg7: memref<1x128xf32, #tpu.memory_space<vmem>>, %arg8: memref<128x128xf32, #tpu.memory_space<vmem>>, %arg9: memref<1x8x128xf32, #tpu.memory_space<vmem>>, %arg10: memref<8x128xf32, #tpu.memory_space<vmem>>, %arg11: memref<1x128xf32, #tpu.memory_space<vmem>>, %arg12: memref<128x128xf32, #tpu.memory_space<vmem>>) attributes {dimension_semantics = [#tpu.dimension_semantics<parallel>, #tpu.dimension_semantics<parallel>, #tpu.dimension_semantics<arbitrary>], iteration_bounds = array<i64: 2, 1, 1>, scalar_prefetch = 0 : i64, scratch_operands = 3 : i64, tpu.core_type = #tpu.core_type<tc>, window_params = [{transform_indices = @transform_0, window_bounds = array<i64: 1, 8, 128>}, {transform_indices = @transform_1, window_bounds = array<i64: 1, 16, 128>}, {transform_indices = @transform_2, window_bounds = array<i64: 1, 16, 128>}, {pipeline_mode = #tpu.pipeline_mode<synchronous>, transform_indices = @transform_3, window_bounds = array<i64: 128, 128>}, {pipeline_mode = #tpu.pipeline_mode<synchronous>, transform_indices = @transform_4, window_bounds = array<i64: 1, 128>}, {pipeline_mode = #tpu.pipeline_mode<synchronous>, transform_indices = @transform_5, window_bounds = array<i64: 128, 128>}, {transform_indices = @transform_6, window_bounds = array<i64: 1, 8, 128>}]} {
    %c0 = arith.constant 0 : index
    %c0_0 = arith.constant 0 : index
    %0 = vector.load %arg6[%c0, %c0_0] : memref<128x128xf32, #tpu.memory_space<vmem>>, vector<128x128xf32>
    %c0_1 = arith.constant 0 : index
    %c0_2 = arith.constant 0 : index
    %1 = vector.load %arg7[%c0_1, %c0_2] : memref<1x128xf32, #tpu.memory_space<vmem>>, vector<1x128xf32>
    %c0_i32 = arith.constant 0 : i32
    %2 = arith.cmpi eq, %arg2, %c0_i32 : i32
    %3 = arith.extui %2 : i1 to i32
    %c0_i32_3 = arith.constant 0 : i32
    %4 = arith.cmpi ne, %3, %c0_i32_3 : i32
    scf.if %4 {
      %c0_24 = arith.constant 0 : index
      %c0_25 = arith.constant 0 : index
      %c0_26 = arith.constant 0 : index
      %32 = vector.load %arg3[%c0_24, %c0_25, %c0_26] : memref<1x8x128xf32, #tpu.memory_space<vmem>>, vector<1x8x128xf32>
      %33 = vector.shape_cast %32 : vector<1x8x128xf32> to vector<8x128xf32>
      %34 = arith.mulf %33, %33 : vector<8x128xf32>
      %cst_27 = arith.constant dense<0.000000e+00> : vector<8xf32>
      %35 = vector.multi_reduction <add>, %34, %cst_27 [1] : vector<8x128xf32> to vector<8xf32>
      %36 = vector.shape_cast %35 : vector<8xf32> to vector<8x1xf32>
      %cst_28 = arith.constant 5.000000e-01 : f32
      %37 = vector.broadcast %cst_28 : f32 to vector<8x1xf32>
      %38 = arith.mulf %37, %36 : vector<8x1xf32>
      %cst_29 = arith.constant dense<0.000000e+00> : vector<8x128xf32>
      %39 = tpu.matmul %33, %0, %cst_29 {dimension_numbers = #tpu.dot_dimension_numbers<[1], [1], [0], [0], [0, 0, 1, 0], [], []>} : vector<8x128xf32>, vector<128x128xf32>, vector<8x128xf32> -> vector<8x128xf32>
      %40 = vector.broadcast %38 : vector<8x1xf32> to vector<8x128xf32>
      %41 = arith.subf %39, %40 : vector<8x128xf32>
      %42 = vector.broadcast %1 : vector<1x128xf32> to vector<8x128xf32>
      %43 = arith.subf %41, %42 : vector<8x128xf32>
      %44 = math.exp %43 : vector<8x128xf32>
      %c0_30 = arith.constant 0 : index
      %c0_31 = arith.constant 0 : index
      %45 = vector.load %arg10[%c0_30, %c0_31] : memref<8x128xf32, #tpu.memory_space<vmem>>, vector<8x128xf32>
      tpu.vector_store %arg10[%c0_30, %c0_31], %44 {strides = array<i32>} : memref<8x128xf32, #tpu.memory_space<vmem>>, vector<8x128xf32>,
      %cst_32 = arith.constant 0.000000e+00 : f32
      %46 = vector.broadcast %cst_32 : f32 to vector<1x128xf32>
      %c0_33 = arith.constant 0 : index
      %c0_34 = arith.constant 0 : index
      %47 = vector.load %arg11[%c0_33, %c0_34] : memref<1x128xf32, #tpu.memory_space<vmem>>, vector<1x128xf32>
      tpu.vector_store %arg11[%c0_33, %c0_34], %46 {strides = array<i32>} : memref<1x128xf32, #tpu.memory_space<vmem>>, vector<1x128xf32>,
      %cst_35 = arith.constant 0.000000e+00 : f32
      %48 = vector.broadcast %cst_35 : f32 to vector<128x128xf32>
      %c0_36 = arith.constant 0 : index
      %c0_37 = arith.constant 0 : index
      %49 = vector.load %arg12[%c0_36, %c0_37] : memref<128x128xf32, #tpu.memory_space<vmem>>, vector<128x128xf32>
      tpu.vector_store %arg12[%c0_36, %c0_37], %48 {strides = array<i32>} : memref<128x128xf32, #tpu.memory_space<vmem>>, vector<128x128xf32>,
    } else {
    }
    %c0_4 = arith.constant 0 : index
    %c0_5 = arith.constant 0 : index
    %c0_6 = arith.constant 0 : index
    %5 = vector.load %arg4[%c0_4, %c0_5, %c0_6] : memref<1x16x128xf32, #tpu.memory_space<vmem>>, vector<1x16x128xf32>
    %6 = vector.shape_cast %5 : vector<1x16x128xf32> to vector<16x128xf32>
    %c0_7 = arith.constant 0 : index
    %c0_8 = arith.constant 0 : index
    %c0_9 = arith.constant 0 : index
    %7 = vector.load %arg5[%c0_7, %c0_8, %c0_9] : memref<1x16x128xf32, #tpu.memory_space<vmem>>, vector<1x16x128xf32>
    %8 = vector.shape_cast %7 : vector<1x16x128xf32> to vector<16x128xf32>
    %9 = arith.mulf %6, %6 : vector<16x128xf32>
    %cst = arith.constant dense<0.000000e+00> : vector<16xf32>
    %10 = vector.multi_reduction <add>, %9, %cst [1] : vector<16x128xf32> to vector<16xf32>
    %11 = vector.shape_cast %10 : vector<16xf32> to vector<16x1xf32>
    %cst_10 = arith.constant 5.000000e-01 : f32
    %12 = vector.broadcast %cst_10 : f32 to vector<16x1xf32>
    %13 = arith.mulf %12, %11 : vector<16x1xf32>
    %cst_11 = arith.constant dense<0.000000e+00> : vector<16x128xf32>
    %14 = tpu.matmul %6, %0, %cst_11 {dimension_numbers = #tpu.dot_dimension_numbers<[1], [1], [0], [0], [0, 0, 1, 0], [], []>} : vector<16x128xf32>, vector<128x128xf32>, vector<16x128xf32> -> vector<16x128xf32>
    %15 = vector.broadcast %13 : vector<16x1xf32> to vector<16x128xf32>
    %16 = arith.subf %14, %15 : vector<16x128xf32>
    %17 = vector.broadcast %1 : vector<1x128xf32> to vector<16x128xf32>
    %18 = arith.subf %16, %17 : vector<16x128xf32>
    %19 = math.exp %18 : vector<16x128xf32>
    %c0_12 = arith.constant 0 : index
    %c0_13 = arith.constant 0 : index
    %20 = vector.load %arg11[%c0_12, %c0_13] : memref<1x128xf32, #tpu.memory_space<vmem>>, vector<1x128xf32>
    %cst_14 = arith.constant dense<0.000000e+00> : vector<128xf32>
    %21 = vector.multi_reduction <add>, %19, %cst_14 [0] : vector<16x128xf32> to vector<128xf32>
    %22 = vector.shape_cast %21 : vector<128xf32> to vector<1x128xf32>
    %23 = arith.addf %20, %22 : vector<1x128xf32>
    %c0_15 = arith.constant 0 : index
    %c0_16 = arith.constant 0 : index
    %24 = vector.load %arg11[%c0_15, %c0_16] : memref<1x128xf32, #tpu.memory_space<vmem>>, vector<1x128xf32>
    tpu.vector_store %arg11[%c0_15, %c0_16], %23 {strides = array<i32>} : memref<1x128xf32, #tpu.memory_space<vmem>>, vector<1x128xf32>,
    %c0_17 = arith.constant 0 : index
    %c0_18 = arith.constant 0 : index
    %25 = vector.load %arg12[%c0_17, %c0_18] : memref<128x128xf32, #tpu.memory_space<vmem>>, vector<128x128xf32>
    %cst_19 = arith.constant dense<0.000000e+00> : vector<128x128xf32>
    %26 = tpu.matmul %19, %8, %cst_19 {dimension_numbers = #tpu.dot_dimension_numbers<[0], [0], [1], [1], [0, 1, 1, 1], [], []>} : vector<16x128xf32>, vector<16x128xf32>, vector<128x128xf32> -> vector<128x128xf32>
    %27 = arith.addf %25, %26 : vector<128x128xf32>
    %c0_20 = arith.constant 0 : index
    %c0_21 = arith.constant 0 : index
    %28 = vector.load %arg12[%c0_20, %c0_21] : memref<128x128xf32, #tpu.memory_space<vmem>>, vector<128x128xf32>
    tpu.vector_store %arg12[%c0_20, %c0_21], %27 {strides = array<i32>} : memref<128x128xf32, #tpu.memory_space<vmem>>, vector<128x128xf32>,
    %c0_i32_22 = arith.constant 0 : i32
    %29 = arith.cmpi eq, %arg2, %c0_i32_22 : i32
    %30 = arith.extui %29 : i1 to i32
    %c0_i32_23 = arith.constant 0 : i32
    %31 = arith.cmpi ne, %30, %c0_i32_23 : i32
    scf.if %31 {
      %c0_24 = arith.constant 0 : index
      %c0_25 = arith.constant 0 : index
      %32 = vector.load %arg10[%c0_24, %c0_25] : memref<8x128xf32, #tpu.memory_space<vmem>>, vector<8x128xf32>
      %c0_26 = arith.constant 0 : index
      %c0_27 = arith.constant 0 : index
      %33 = vector.load %arg11[%c0_26, %c0_27] : memref<1x128xf32, #tpu.memory_space<vmem>>, vector<1x128xf32>
      %34 = vector.broadcast %33 : vector<1x128xf32> to vector<8x128xf32>
      %35 = arith.mulf %32, %34 : vector<8x128xf32>
      %cst_28 = arith.constant dense<0.000000e+00> : vector<8xf32>
      %36 = vector.multi_reduction <add>, %35, %cst_28 [1] : vector<8x128xf32> to vector<8xf32>
      %37 = vector.shape_cast %36 : vector<8xf32> to vector<8x1xf32>
      %c0_29 = arith.constant 0 : index
      %c0_30 = arith.constant 0 : index
      %38 = vector.load %arg12[%c0_29, %c0_30] : memref<128x128xf32, #tpu.memory_space<vmem>>, vector<128x128xf32>
      %cst_31 = arith.constant dense<0.000000e+00> : vector<8x128xf32>
      %39 = tpu.matmul %32, %38, %cst_31 {dimension_numbers = #tpu.dot_dimension_numbers<[1], [0], [0], [1], [0, 0, 1, 1], [], []>} : vector<8x128xf32>, vector<128x128xf32>, vector<8x128xf32> -> vector<8x128xf32>
      %cst_32 = arith.constant 9.99999993E-9 : f32
      %40 = vector.broadcast %cst_32 : f32 to vector<8x1xf32>
      %41 = arith.addf %37, %40 : vector<8x1xf32>
      %42 = tpu.reciprocal %41 {approx = true} : vector<8x1xf32> -> vector<8x1xf32>
      %43 = vector.broadcast %42 : vector<8x1xf32> to vector<8x128xf32>
      %44 = arith.mulf %39, %43 : vector<8x128xf32>
      %c0_33 = arith.constant 0 : index
      %c0_34 = arith.constant 0 : index
      %45 = vector.load %arg8[%c0_33, %c0_34] : memref<128x128xf32, #tpu.memory_space<vmem>>, vector<128x128xf32>
      %cst_35 = arith.constant dense<0.000000e+00> : vector<8x128xf32>
      %46 = tpu.matmul %44, %45, %cst_35 {dimension_numbers = #tpu.dot_dimension_numbers<[1], [0], [0], [1], [0, 0, 1, 1], [], []>} : vector<8x128xf32>, vector<128x128xf32>, vector<8x128xf32> -> vector<8x128xf32>
      %c0_36 = arith.constant 0 : index
      %c0_37 = arith.constant 0 : index
      %c0_38 = arith.constant 0 : index
      %47 = vector.load %arg9[%c0_36, %c0_37, %c0_38] : memref<1x8x128xf32, #tpu.memory_space<vmem>>, vector<1x8x128xf32>
      %48 = vector.shape_cast %47 : vector<1x8x128xf32> to vector<8x128xf32>
      %49 = vector.shape_cast %46 : vector<8x128xf32> to vector<1x8x128xf32>
      tpu.vector_store %arg9[%c0_36, %c0_37, %c0_38], %49 {strides = array<i32>} : memref<1x8x128xf32, #tpu.memory_space<vmem>>, vector<1x8x128xf32>,
    } else {
    }
    return
  }
  func.func @transform_0(%arg0: i32, %arg1: i32, %arg2: i32) -> (i32, i32, i32) {
    %c0_i32 = arith.constant 0 : i32
    %c0_i32_0 = arith.constant 0 : i32
    return %arg0, %arg1, %c0_i32 : i32, i32, i32
  }
  func.func @transform_1(%arg0: i32, %arg1: i32, %arg2: i32) -> (i32, i32, i32) {
    %c0_i32 = arith.constant 0 : i32
    %c0_i32_0 = arith.constant 0 : i32
    return %arg0, %arg2, %c0_i32 : i32, i32, i32
  }
  func.func @transform_2(%arg0: i32, %arg1: i32, %arg2: i32) -> (i32, i32, i32) {
    %c0_i32 = arith.constant 0 : i32
    %c0_i32_0 = arith.constant 0 : i32
    return %arg0, %arg2, %c0_i32 : i32, i32, i32
  }
  func.func @transform_3(%arg0: i32, %arg1: i32, %arg2: i32) -> (i32, i32) {
    %c0_i32 = arith.constant 0 : i32
    %c0_i32_0 = arith.constant 0 : i32
    %c0_i32_1 = arith.constant 0 : i32
    return %c0_i32, %c0_i32_0 : i32, i32
  }
  func.func @transform_4(%arg0: i32, %arg1: i32, %arg2: i32) -> (i32, i32) {
    %c0_i32 = arith.constant 0 : i32
    %c0_i32_0 = arith.constant 0 : i32
    %c0_i32_1 = arith.constant 0 : i32
    return %c0_i32, %c0_i32_0 : i32, i32
  }
  func.func @transform_5(%arg0: i32, %arg1: i32, %arg2: i32) -> (i32, i32) {
    %c0_i32 = arith.constant 0 : i32
    %c0_i32_0 = arith.constant 0 : i32
    %c0_i32_1 = arith.constant 0 : i32
    return %c0_i32, %c0_i32_0 : i32, i32
  }
  func.func @transform_6(%arg0: i32, %arg1: i32, %arg2: i32) -> (i32, i32, i32) {
    %c0_i32 = arith.constant 0 : i32
    %c0_i32_0 = arith.constant 0 : i32
    return %arg0, %arg1, %c0_i32 : i32, i32, i32
  }
}

</mosaic_0001>

<bundles_post_ra>
// kernel: tpu_custom_call.1
= control target key start
LH: loop header
LB: loop body
LE: loop exit
PB: predicated region body
PF: predicated region fallthrough
CT: control target
= control target key end

     0   :  { %s2298_s0 = inlined_call_operand.hbm [shape: f32[2,8,128], index: 0, kind: input, shape index: {}]   ;;  %s2299_s1 = inlined_call_operand.hbm [shape: f32[2,16,128], index: 1, kind: input, shape index: {}]   ;;  %s2300_s2 = inlined_call_operand.hbm [shape: f32[2,16,128], index: 2, kind: input, shape index: {}]   ;;  %s2301_s3 = inlined_call_operand.hbm [shape: f32[128,128], index: 3, kind: input, shape index: {}]   ;;  %s2302_s4 = inlined_call_operand.vmem [shape: f32[1,128], index: 4, kind: input, shape index: {}]   ;;  %s2303_s5 = inlined_call_operand.hbm [shape: f32[128,128], index: 5, kind: input, shape index: {}]   ;;  %s2304_s6 = inlined_call_operand.hbm [shape: f32[2,8,128], index: 6, kind: output, shape index: {}]  }
   0x1   :  { %2314 = sst [smem:[#allocation23_spill]] %s2299_s1 }
   0x2   :  { %2315 = sst [smem:[#allocation24_spill]] %s2300_s2 }
   0x3   :  { %2316 = sst [smem:[#allocation25_spill]] %s2301_s3 }
   0x4   :  { %2317 = sst [smem:[#allocation26_spill]] %s2304_s6 }
   0x5   :  { %11 = vsyncpa [#allocation6], 0 }
   0x6   :  { %13 = vsyncpa [#allocation6 + $0x1], 0 }
   0x7   :  { %14 = vsyncpa [#allocation9], 0 }
   0x8   :  { %16 = vsyncpa [#allocation9 + $0x1], 0 }
   0x9   :  { %17 = vsyncpa [#allocation12], 0 }
   0xa   :  { %18 = vsyncpa [#allocation7], 0 }
   0xb   :  { %20 = vsyncpa [#allocation7 + $0x1], 0  ;;  %s1948_s21 = smov 0   ;;  %s1950_s22 = smov 0  }
   0xc   :  { %s1952_s23 = smov 0   ;;  %s1954_s24 = smov 0  }
   0xd   :  { %s1956_s25 = smov 0   ;;  %s1958_s26 = smov 0  }
   0xe LB: > { %2318 = sst [smem:[#allocation19_spill]] %s1881_s21  ;;  %s1979_s27 = sadd.s32 4294967295, %s1901_s26   ;;  %s1901_s26 = sphi %s1958_s26, %s26_s26   ;;  %s1897_s25 = sphi %s1956_s25, %s2350_s25   ;;  %s1893_s24 = sphi %s1954_s24, %s2349_s24   ;;  %s1889_s23 = sphi %s1952_s23, %s2348_s23   ;;  %s1885_s22 = sphi %s1950_s22, %s2347_s22   ;;  %s1881_s21 = sphi %s1948_s21, %s2346_s21  }
   0xf   : > { %s1273_s28 = sadd.s32 4294967294, %s1901_s26   ;;  %p61_p0 = scmp.ne.s32.totalorder %s1889_s23, %s1885_s22 }
  0x10   : > { %p62_p1 = scmp.eq.s32.totalorder %s1901_s26, 0  ;;  %p67_p2 = scmp.ne.s32.totalorder %s1885_s22, %s1881_s21 }
  0x11   : > { %p2305_p3 = scmp.eq.s32.totalorder %s1979_s27, 0  ;;  %p212_p4 = scmp.eq.s32.totalorder %s1979_s27, 1 }
  0x12   : > { %p1990_p5 = por %p62_p1, %p61_p0  ;;  %p218_p6 = scmp.eq.s32.totalorder %s1273_s28, 1 }
  0x13   : > { %p1996_p7 = por %p2305_p3, %p67_p2  ;;  %p2000_p8 = por %p212_p4, %p61_p0 }
  0x14   : > { %p2004_p9 = por %p218_p6, %p67_p2  ;;  %p1274_p10 = scmp.ge.s32.totalorder %s1901_s26, 1 }
  0x15   : > { %p225_p11 = scmp.lt.s32.totalorder %s1901_s26, 3  ;;  %s1903_s11 = smov [#allocation11]  }
  0x16   : > { %s2322_s9 = scalar_select %p2004_p9, 1, 0 }
  0x17   : > { %p2010_p12 = pnand %p1274_p10, %p225_p11  ;;  %s237_s12 = sshll.u32 %s1903_s11, 4  ;;  %s238_s12 = int_to_ptr.vmem [resolvable:$true] %s237_s12 }
  0x18   : > { %2323 = sst [smem:[#allocation20_spill]] %s2322_s9  ;;  %s45_s14 = sadd.s32 1, %s1897_s25 }
  0x19   : > { %p1588_p13 = pneg %p2010_p12  ;;  %s2026_s15 = sand.u32 1, %s1889_s23  }
  0x1a   : > { %p2028_p2 = scmp.ge.s32.totalorder %s45_s14, 2  ;;  %s1688_s17 = scalar_lea.vmem %s238_s12, 2048 }
  0x1b   : > { %p2020_p4 = pnand %p1588_p13, %p2305_p3  ;;  %p1689_p10 = scmp.ne.s32.totalorder %s238_s12, %s1688_s17 }
  0x1c   : > { %p1696_p0 = scmp.lt.s32.totalorder %s238_s12, %s238_s12  ;;  %p1697_p3 = scmp.lt.s32.totalorder %s1688_s17, %s1688_s17 }
  0x1d   : > { %p1679_p6 = pneg %p2020_p4 }
  0x1e   : > { %p1698_p1 = por %p1697_p3, %p1696_p0 }
  0x1f   : > { %p1691_p11 = pnand %p1689_p10, %p1679_p6 }
  0x21   : > { %p1692_p13 = pneg %p1691_p11 }
  0x23   : > { %p1699_p9 = pnand %p1698_p1, %p1692_p13 }
  0x25   : > { %1702 = shalt.err (!%p1699_p9)
}
  0x26   : > { %s2309_s18 = smov 128   ;;  %s2311_s19 = smov 8  }
  0x27   : > { %s2327_s3 = sld [smem:[#allocation25_spill]]  ;;  %s2352_s14 = smov (%p2028_p2, %s45_s14), 0 }
  0x28   : > { %2328 = sst [smem:[#allocation21_spill]] %s2352_s14  ;;  %p2329_p3 = scmp.lt.s32.totalorder %s1901_s26, 2 }
  0x29   : > { %s286_s17 = sand.u32 1, %s1901_s26   ;;  %s49_s29 = ssub.s32 %s1897_s25, %s2352_s14 }
  0x2a   : > { %p2053_p9 = pnand %p2329_p3, %p1990_p5  ;;  %p52_p0 = scmp.eq.s32.totalorder %s49_s29, 0 }
  0x2b   : > { %s1280_s9 = sshll.u32 %s2026_s15, 4  ;;  %s1314_s21 = sshll.u32 %s1897_s25, 8 }
  0x2c   : > { %s2331_s6 = sadd.s32 1, %s1889_s23  ;;  %s2333_s1 = sld [smem:[#allocation23_spill]] }
  0x2d   : > { %1591 = dma.hbm_to_vmem [thread:$0]  (!%p2020_p4), %s2327_s3, 2048, %s238_s12, [#allocation12], %s2309_s18, %s2309_s18, %s2311_s19  }
  0x2e   : > { %s2065_s20 = scalar_select %p52_p0, %s1889_s23, %s2331_s6  }
  0x2f   : > { %s290_s28 = scalar_lea.vmem [#allocation8], %s1280_s9  ;;  %s2070_s19 = scalar_lea.sflag [#allocation9], %s286_s17 }
  0x30   : > { %2332 = sst [smem:[#allocation22_spill]] %s2065_s20  ;;  %s299_s18 = sshll.u32 %s290_s28, 4  ;;  %s300_s18 = int_to_ptr.vmem [resolvable:$true] %s299_s18 }
  0x31   : > { %p1705_p5 = pneg %p2053_p9  ;;  %s1716_s3 = scalar_lea.vmem %s300_s18, 256 }
  0x32   : > { %s298_s30 = scalar_lea.hbm %s2333_s1, %s1314_s21  ;;  %p1717_p1 = scmp.ne.s32.totalorder %s300_s18, %s1716_s3 }
  0x33   : > { %s1906_s29 = smov [#allocation8]  }
  0x34   : > { %p1719_p2 = pnand %p1717_p1, %p1705_p5  ;;  %s1721_s6 = sshll.u32 %s1906_s29, 4  ;;  %s1722_s6 = int_to_ptr.vmem [resolvable:$false] %s1721_s6 }
  0x35   : > { %s1723_s14 = scalar_lea.vmem %s1722_s6, 512  ;;  %p1724_p11 = scmp.lt.s32.totalorder %s300_s18, %s1722_s6 }
  0x36   : > { %p1720_p10 = pneg %p1719_p2  ;;  %p1725_p13 = scmp.lt.s32.totalorder %s1723_s14, %s1716_s3 }
  0x38   : > { %p1726_p3 = por %p1725_p13, %p1724_p11 }
  0x3a   : > { %p1727_p0 = pnand %p1726_p3, %p1720_p10 }
  0x3c   : > { %1730 = shalt.err (!%p1727_p0)
}
  0x3d   : > { %s2334_s17 = smov 8   ;;  %s2335_s12 = smov 128  }
  0x3e   : > { %1601 = dma.hbm_to_vmem [thread:$0]  (!%p2053_p9), %s298_s30, 256, %s300_s18, %s2070_s19, %s2335_s12, %s2335_s12, %s2334_s17  }
  0x3f   : > { %s2336_s2 = sld [smem:[#allocation24_spill]]  ;;  %s313_s29 = scalar_lea.vmem [#allocation10], %s1280_s9 }
  0x40   : > { %s322_s20 = sshll.u32 %s313_s29, 4  ;;  %s1907_s6 = smov [#allocation13]   ;;  %s2104_s20 = int_to_ptr.vmem [resolvable:$true] %s322_s20 }
  0x41   : > { %s253_s3 = sshll.u32 %s1907_s6, 4  ;;  %s254_s3 = int_to_ptr.vmem [resolvable:$true] %s253_s3 }
  0x42   : > { %s1742_s14 = scalar_lea.vmem %s254_s3, 2048  ;;  %p1750_p11 = scmp.lt.s32.totalorder %s254_s3, %s254_s3 }
  0x43   : > { %p1743_p1 = scmp.ne.s32.totalorder %s254_s3, %s1742_s14  ;;  %p1751_p13 = scmp.lt.s32.totalorder %s1742_s14, %s1742_s14 }
  0x45   : > { %s2086_s1 = scalar_lea.hbm %s2336_s2, %s1314_s21  ;;  %p1745_p2 = pnand %p1743_p1, %p1679_p6 }
  0x46   : > { %p1752_p3 = por %p1751_p13, %p1750_p11 }
  0x47   : > { %p1746_p10 = pneg %p1745_p2 }
  0x49   : > { %p1753_p0 = pnand %p1752_p3, %p1746_p10 }
  0x4b   : > { %1756 = shalt.err (!%p1753_p0)
}
  0x4c   : > { %1594 = dma.hbm_to_vmem [thread:$0]  (!%p2020_p4), %s2303_s5, 2048, %s254_s3, [#allocation12], %s2335_s12, %s2335_s12, %s2334_s17  }
  0x4d   : > { %s1278_s18 = sshll.u32 %s2026_s15, 3  ;;  %s1279_s30 = sshll.u32 %s1897_s25, 7 }
  0x4e   : > { %s277_s29 = scalar_lea.hbm %s2298_s0, %s1279_s30  ;;  %s271_s13 = scalar_lea.vmem [#allocation5], %s1278_s18 }
  0x4f   : > { %s279_s6 = sshll.u32 %s271_s13, 4  ;;  %s268_s14 = scalar_lea.sflag [#allocation6], %s2026_s15  ;;  %s280_s6 = int_to_ptr.vmem [resolvable:$true] %s279_s6 }
  0x50   : > { %s1770_s2 = scalar_lea.vmem %s280_s6, 128  ;;  %s1908_s21 = smov [#allocation5]  }
  0x51   : > { %p1771_p6 = scmp.ne.s32.totalorder %s280_s6, %s1770_s2  ;;  %s1775_s3 = sshll.u32 %s1908_s21, 4  ;;  %s1776_s3 = int_to_ptr.vmem [resolvable:$false] %s1775_s3 }
  0x52   : > { %s1777_s9 = scalar_lea.vmem %s1776_s3, 256  ;;  %p1778_p4 = scmp.lt.s32.totalorder %s280_s6, %s1776_s3 }
  0x53   : > { %p1773_p1 = pnand %p1771_p6, %p1705_p5  ;;  %p1779_p10 = scmp.lt.s32.totalorder %s1777_s9, %s1770_s2 }
  0x55   : > { %p1774_p2 = pneg %p1773_p1  ;;  %p1780_p11 = por %p1779_p10, %p1778_p4 }
  0x57   : > { %p1781_p13 = pnand %p1780_p11, %p1774_p2 }
  0x59   : > { %1784 = shalt.err (!%p1781_p13)
}
  0x5a   : > { %1598 = dma.hbm_to_vmem [thread:$0]  (!%p2053_p9), %s277_s29, 128, %s280_s6, %s268_s14  }
  0x5b   : > { %s1798_s15 = scalar_lea.vmem %s2104_s20, 256  ;;  %s1909_s18 = smov [#allocation10]  }
  0x5c   : > { %p1799_p3 = scmp.ne.s32.totalorder %s2104_s20, %s1798_s15  ;;  %s1803_s30 = sshll.u32 %s1909_s18, 4  ;;  %s1804_s30 = int_to_ptr.vmem [resolvable:$false] %s1803_s30 }
  0x5d   : > { %s1805_s2 = scalar_lea.vmem %s1804_s30, 512  ;;  %p1806_p1 = scmp.lt.s32.totalorder %s2104_s20, %s1804_s30 }
  0x5e   : > { %p1801_p0 = pnand %p1799_p3, %p1705_p5  ;;  %p1807_p2 = scmp.lt.s32.totalorder %s1805_s2, %s1798_s15 }
  0x60   : > { %p1802_p6 = pneg %p1801_p0  ;;  %p1808_p4 = por %p1807_p2, %p1806_p1 }
  0x62   : > { %p1809_p10 = pnand %p1808_p4, %p1802_p6 }
  0x64   : > { %1812 = shalt.err (!%p1809_p10)
}
  0x65   : > { %1604 = dma.hbm_to_vmem [thread:$0]  (!%p2053_p9), %s2086_s1, 256, %s2104_s20, %s2070_s19, %s2335_s12, %s2335_s12, %s2334_s17  }
  0x66   : > { %334 = sbr.rel (%p2010_p12) target bundleno = 1206 (0x4b6), region = 44  ;;  %s2129_s16 = sand.u32 (!%p2010_p12), 1, %s1885_s22  }
  0x67   : > { %s1287_s28 = sshll.u32 (!%p2010_p12), %s2129_s16, 3  ;;  %s337_s29 = scalar_lea.sflag (!%p2010_p12), [#allocation6], %s2129_s16 }
  0x68   : > { %s2135_s11 = scalar_lea.vmem (!%p2010_p12), [#allocation5], %s1287_s28 }
  0x6b   : > { %1864 = dma.done.wait (%p1996_p7), %s337_s29, 128  }
  0x6c   : > { %1866 = vsyncadd (%p1996_p7), %s337_s29, 4294967168  ;;  %s345_s1 = sand.u32 1, %s1979_s27   ;;  %s1288_s10 = sshll.u32 %s2129_s16, 4 }
  0x6d   : > { %s346_s19 = scalar_lea.sflag [#allocation9], %s345_s1  ;;  %s349_s20 = scalar_lea.vmem [#allocation8], %s1288_s10 }
  0x6e   : > { %1868 = dma.done.wait (%p1996_p7), %s346_s19, 512  }
  0x6f   : > { %1870 = vsyncadd (%p1996_p7), %s346_s19, 4294966784  ;;  %s2147_s17 = scalar_lea.vmem [#allocation10], %s1288_s10  ;;  %p2337_p12 = scmp.eq.s32.totalorder %s1979_s27, 0 }
  0x71   : > { %1872 = dma.done.wait (%p2337_p12), [#allocation12], 4096   ;;  %p2338_p9 = pmov %p2337_p12 }
  0x72   : > { %v1910_v0 = vmov 0.0   ;;  %vm1911_vm0 = vmmov 0   ;;  %v422_v1 = vld [vmem:[#allocation11 + $0x78] sm:$0xff]  ;;  %v421_v2 = vld [vmem:[#allocation11 + $0x70] sm:$0xff]  ;;  %v420_v3 = vld [vmem:[#allocation11 + $0x68] sm:$0xff]  ;;  %vm690_vm1 = vcmask 130048  }
  0x73   : > { %1874 = vsyncadd (%p2338_p9), [#allocation12], 4294963200  ;;  %1404 = vmatprep.subr.mxu0 %v1910_v0  ;;  %514 = vst [vmem:[#allocation3] sm:$0x1] %v1910_v0  ;;  %1436 = vmatprep.mubr.msk.f32.mxu0 %vm1911_vm0, %v1910_v0  ;;  %v531_v4 = vld [vmem:[%s349_s20] sm:$0xff]  ;;  %v2159_v6 = vld [vmem:[%s349_s20 + $0x8] sm:$0xff] }
  0x74   : > { %1439 = vmatprep.subr.mxu1 %v422_v1  ;;  %1405 = vmatpush3.xpose.msra.mxu0 %v422_v1  ;;  %v535_v5 = vmul.f32 %v531_v4, %v531_v4  ;;  %v419_v7 = vld [vmem:[#allocation11 + $0x60] sm:$0xff]  ;;  %v536_v8 = vmul.f32 %v2159_v6, %v2159_v6  ;;  %v2165_v9 = vld [vmem:[%s2135_s11] sm:$0xff]  ;;  %v416_v13 = vld [vmem:[#allocation11 + $0x48] sm:$0xff]  ;;  %s404_s12 = scalar_lea.vmem [#allocation14], %s1287_s28  ;;  %s1311_s6 = sshll.u32 %s1893_s24, 7 }
  0x75   : > { %1440 = vmatpush3.xpose.msra.mxu1 %v422_v1  ;;  %1406 = vmatprep.subr.mxu0 %v1910_v0  ;;  %v418_v10 = vld [vmem:[#allocation11 + $0x58] sm:$0xff]  ;;  %v429_v11 = vmul.f32 %v2165_v9, %v2165_v9  ;;  %v417_v12 = vld [vmem:[#allocation11 + $0x50] sm:$0xff]  ;;  %v415_v14 = vld [vmem:[#allocation11 + $0x40] sm:$0xff]  ;;  %s1121_s13 = sshll.u32 %s404_s12, 4  ;;  %s2339_s3 = sld [smem:[#allocation26_spill]]  ;;  %s2247_s13 = int_to_ptr.vmem [resolvable:$true] %s1121_s13 }
  0x76   : > { %1441 = vmatprep.subr.mxu1 %v421_v2  ;;  %1471 = vmatprep.mubr.f32.mxu1 %v531_v4  ;;  %v414_v15 = vld [vmem:[#allocation11 + $0x38] sm:$0xff]  ;;  %v413_v16 = vld [vmem:[#allocation11 + $0x30] sm:$0xff]  ;;  %v412_v17 = vld [vmem:[#allocation11 + $0x28] sm:$0xff]  ;;  %s1107_s15 = scalar_lea.sflag [#allocation7], %s2129_s16  ;;  %s1813_s18 = scalar_lea.vmem %s2247_s13, 128 }
  0x77   : > { %537 = vadd.xlane.f32.xlu0 %v535_v5  ;;  %v411_v18 = vld [vmem:[#allocation11 + $0x20] sm:$0xff]  ;;  %v410_v19 = vld [vmem:[#allocation11 + $0x18] sm:$0xff]  ;;  %v409_v20 = vld [vmem:[#allocation11 + $0x10] sm:$0xff]  ;;  %p1814_p7 = scmp.ne.s32.totalorder %s2247_s13, %s1813_s18  ;;  %s1912_s24 = smov [#allocation14]  }
  0x78   : > { %1407 = vmatpush3.xpose.msra.mxu0 %v421_v2  ;;  %v408_v21 = vld [vmem:[#allocation11 + $0x8] sm:$0xff]  ;;  %v407_v22 = vld [vmem:[#allocation11] sm:$0xff]  ;;  %s1817_s30 = sshll.u32 %s1912_s24, 4  ;;  %s1818_s30 = int_to_ptr.vmem [resolvable:$false] %s1817_s30 }
  0x79   : > { %1442 = vmatpush3.xpose.msra.mxu1 %v421_v2  ;;  %1408 = vmatprep.subr.mxu0 %v1910_v0  ;;  %v1316_v30 = vld [vmem:[%s2302_s4] ss:$0 sm:$0xff]  ;;  %v533_v43 = vld [vmem:[%s2147_s17] sm:$0xff]  ;;  %p1815_p5 = pnand %p1814_p7, %p2000_p8  ;;  %s1819_s2 = scalar_lea.vmem %s1818_s30, 256 }
  0x7a   : > { %1443 = vmatprep.subr.mxu1 %v420_v3  ;;  %v534_v42 = vld [vmem:[%s2147_s17 + $0x8] sm:$0xff]  ;;  %p1820_p13 = scmp.lt.s32.totalorder %s2247_s13, %s1818_s30  ;;  %p1821_p3 = scmp.lt.s32.totalorder %s1819_s2, %s1813_s18 }
  0x7b   : > { %539 = vadd.xlane.f32.xlu0 %v536_v8  ;;  %v632_v52 = vld [vmem:[#allocation3] sm:$0x1]  ;;  %s2252_s9 = scalar_lea.hbm %s2339_s3, %s1311_s6  ;;  %p1816_p11 = pneg %p1815_p5 }
  0x7c   : > { %1409 = vmatpush3.xpose.msra.mxu0 %v420_v3  ;;  %p1822_p0 = por %p1821_p3, %p1820_p13 }
  0x7d   : > { %1444 = vmatpush3.xpose.msra.mxu1 %v420_v3  ;;  %1410 = vmatprep.subr.mxu0 %v1910_v0 }
  0x7e   : > { %1445 = vmatprep.subr.mxu1 %v419_v7  ;;  %p1823_p6 = pnand %p1822_p0, %p1816_p11 }
  0x7f   : > { %430 = vadd.xlane.f32.xlu0 %v429_v11 }
  0x80   : > { %1411 = vmatpush3.xpose.msra.mxu0 %v419_v7 }
  0x81   : > { %1446 = vmatpush3.xpose.msra.mxu1 %v419_v7  ;;  %1412 = vmatprep.subr.mxu0 %v1910_v0 }
  0x82   : > { %1447 = vmatprep.subr.mxu1 %v418_v10 }
  0x84   : > { %1413 = vmatpush3.xpose.msra.mxu0 %v418_v10 }
  0x85   : > { %1448 = vmatpush3.xpose.msra.mxu1 %v418_v10  ;;  %1414 = vmatprep.subr.mxu0 %v1910_v0 }
  0x86   : > { %1449 = vmatprep.subr.mxu1 %v417_v12 }
  0x88   : > { %1415 = vmatpush3.xpose.msra.mxu0 %v417_v12 }
  0x89   : > { %1450 = vmatpush3.xpose.msra.mxu1 %v417_v12  ;;  %1416 = vmatprep.subr.mxu0 %v1910_v0  ;;  %v1034_v12 = vld [vmem:[#allocation13 + $0x78] sm:$0xff] }
  0x8a   : > { %1451 = vmatprep.subr.mxu1 %v416_v13 }
  0x8c   : > { %1417 = vmatpush3.xpose.msra.mxu0 %v416_v13 }
  0x8d   : > { %1452 = vmatpush3.xpose.msra.mxu1 %v416_v13  ;;  %1418 = vmatprep.subr.mxu0 %v1910_v0  ;;  %v1033_v13 = vld [vmem:[#allocation13 + $0x70] sm:$0xff] }
  0x8e   : > { %1453 = vmatprep.subr.mxu1 %v415_v14 }
  0x90   : > { %1419 = vmatpush3.xpose.msra.mxu0 %v415_v14 }
  0x91   : > { %1454 = vmatpush3.xpose.msra.mxu1 %v415_v14  ;;  %1420 = vmatprep.subr.mxu0 %v1910_v0  ;;  %v1032_v14 = vld [vmem:[#allocation13 + $0x68] sm:$0xff] }
  0x92   : > { %1455 = vmatprep.subr.mxu1 %v414_v15 }
  0x94   : > { %1421 = vmatpush3.xpose.msra.mxu0 %v414_v15 }
  0x95   : > { %1456 = vmatpush3.xpose.msra.mxu1 %v414_v15  ;;  %1422 = vmatprep.subr.mxu0 %v1910_v0  ;;  %v1031_v15 = vld [vmem:[#allocation13 + $0x60] sm:$0xff] }
  0x96   : > { %1457 = vmatprep.subr.mxu1 %v413_v16 }
  0x98   : > { %1423 = vmatpush3.xpose.msra.mxu0 %v413_v16 }
  0x99   : > { %1458 = vmatpush3.xpose.msra.mxu1 %v413_v16  ;;  %1424 = vmatprep.subr.mxu0 %v1910_v0  ;;  %v1030_v16 = vld [vmem:[#allocation13 + $0x58] sm:$0xff] }
  0x9a   : > { %1459 = vmatprep.subr.mxu1 %v412_v17 }
  0x9c   : > { %1425 = vmatpush3.xpose.msra.mxu0 %v412_v17 }
  0x9d   : > { %1460 = vmatpush3.xpose.msra.mxu1 %v412_v17  ;;  %1426 = vmatprep.subr.mxu0 %v1910_v0  ;;  %v1029_v17 = vld [vmem:[#allocation13 + $0x50] sm:$0xff] }
  0x9e   : > { %1461 = vmatprep.subr.mxu1 %v411_v18 }
  0xa0   : > { %1427 = vmatpush3.xpose.msra.mxu0 %v411_v18 }
  0xa1   : > { %1462 = vmatpush3.xpose.msra.mxu1 %v411_v18  ;;  %1428 = vmatprep.subr.mxu0 %v1910_v0  ;;  %v1028_v18 = vld [vmem:[#allocation13 + $0x48] sm:$0xff] }
  0xa2   : > { %1463 = vmatprep.subr.mxu1 %v410_v19 }
  0xa4   : > { %1429 = vmatpush3.xpose.msra.mxu0 %v410_v19 }
  0xa5   : > { %1464 = vmatpush3.xpose.msra.mxu1 %v410_v19  ;;  %1430 = vmatprep.subr.mxu0 %v1910_v0  ;;  %v1027_v19 = vld [vmem:[#allocation13 + $0x40] sm:$0xff] }
  0xa6   : > { %1465 = vmatprep.subr.mxu1 %v409_v20 }
  0xa8   : > { %1431 = vmatpush3.xpose.msra.mxu0 %v409_v20 }
  0xa9   : > { %1466 = vmatpush3.xpose.msra.mxu1 %v409_v20  ;;  %1432 = vmatprep.subr.mxu0 %v1910_v0  ;;  %v1026_v20 = vld [vmem:[#allocation13 + $0x38] sm:$0xff] }
  0xaa   : > { %1467 = vmatprep.subr.mxu1 %v408_v21 }
  0xac   : > { %1433 = vmatpush3.xpose.msra.mxu0 %v408_v21 }
  0xad   : > { %1468 = vmatpush3.xpose.msra.mxu1 %v408_v21  ;;  %1434 = vmatprep.subr.mxu0 %v1910_v0  ;;  %v1025_v21 = vld [vmem:[#allocation13 + $0x30] sm:$0xff] }
  0xae   : > { %1469 = vmatprep.subr.mxu1 %v407_v22 }
  0xb0   : > { %1435 = vmatpush3.xpose.msra.mxu0 %v407_v22 }
  0xb1   : > { %1470 = vmatpush3.xpose.msra.mxu1 %v407_v22  ;;  %1474 = vmatprep.subr.mxu0 %v534_v42  ;;  %v1024_v22 = vld [vmem:[#allocation13 + $0x28] sm:$0xff] }
  0xb2   : > { %1502 = vmatprep.subr.mxu1 %v1910_v0 }
  0xb3   : > { %1437 = vmatmul.mubr.f32.vlgmr.msra.gmra.mxu0 %v2165_v9 }
  0xb4   : > { %1472 = vmatmul.mubr.f32.vlgmr.msra.gmra.mxu1 %v2159_v6  ;;  %1475 = vmatpush3.msra.mxu0 %v534_v42 }
  0xb5   : > { %1534 = vmatprep.mubr.msk.f32.mxu1 %vm1911_vm0, %v1910_v0  ;;  %1476 = vmatprep.subr.mxu0 %v533_v43 }
  0xb6   : > { %1477 = vmatpush3.msra.mxu0 %v533_v43  ;;  %v1019_v43 = vld [vmem:[#allocation13] sm:$0xff] }
  0xb7   : > { %1537 = vmatprep.subr.mxu0 %v1910_v0 }
 0x100   : > { %v538_v23 = vpop.xlane.xlu0 %537 }
 0x101   : > { %v541_v28 = vmul.f32 0.5, %v538_v23  ;;  %v1023_v23 = vld [vmem:[#allocation13 + $0x20] sm:$0xff] }
 0x104   : > { %v540_v24 = vpop.xlane.xlu0 %539 }
 0x105   : > { %v542_v27 = vmul.f32 0.5, %v540_v24  ;;  %v1022_v24 = vld [vmem:[#allocation13 + $0x18] sm:$0xff] }
 0x108   : > { %v431_v25 = vpop.xlane.xlu0 %430 }
 0x109   : > { %v432_v26 = vmul.f32 0.5, %v431_v25  ;;  %v1021_v25 = vld [vmem:[#allocation13 + $0x10] sm:$0xff] }
 0x173   : > { %v499_v29 = vpop.f32.mrf.mxu0 }
 0x174   : > { %v1473_v31 = vpop.f32.mrf.mxu1  ;;  %v503_v32 = vsub.f32 %v499_v29, %v432_v26  ;;  %v1020_v26 = vld [vmem:[#allocation13 + $0x8] sm:$0xff] }
 0x175   : > { %v619_v33 = vsub.f32 %v1473_v31, %v542_v27  ;;  %v1438_v34 = vpop.f32.mrf.mxu0 }
 0x176   : > { %v609_v35 = vpop.f32.mrf.mxu1  ;;  %v510_v36 = vsub.f32 %v503_v32, %v1316_v30 }
 0x177   : > { %v627_v37 = vsub.f32 %v619_v33, %v1316_v30  ;;  %v618_v38 = vsub.f32 %v609_v35, %v541_v28 }
 0x178   : > { %v511_v55 = vmul.f32 1.442695, %v510_v36 }
 0x179   : > { %v630_v39 = vmul.f32 1.442695, %v627_v37  ;;  %v626_v40 = vsub.f32 %v618_v38, %v1316_v30 }
 0x17b   : > { %v628_v41 = vmul.f32 1.442695, %v626_v40  ;;  %1669 = vpow2.f32 %v630_v39 }
 0x17d   : > { %1671 = vpow2.f32 %v628_v41 }
 0x17e   : > { %1673 = vpow2.f32 %v511_v55 }
 0x188   : > { %v1670_v44 = vpop.eup %1669 }
 0x18a   : > { %v1672_v45 = vpop.eup %1671 }
 0x18b   : > { %v633_v46 = vadd.f32 %v1672_v45, %v1670_v44  ;;  %658 = vxpose.xlu1.b32.start [1/2] (short) %v1672_v45, 128  ;;  %v2192_v56 = vpop.eup %1673 }
 0x18d   : > { %v634_v47 = vrot.slane %v633_v46, 4 }
 0x18f   : > { %v635_v48 = vadd.f32 %v634_v47, %v633_v46  ;;  %659 = vxpose.xlu1.b32.end [2/2] (short) %v1670_v44, 128 }
 0x191   : > { %v636_v49 = vrot.slane %v635_v48, 2 }
 0x193   : > { %v637_v50 = vadd.f32 %v636_v49, %v635_v48 }
 0x195   : > { %v638_v51 = vrot.slane %v637_v50, 1 }
 0x197   : > { %v639_v53 = vadd.f32 %v638_v51, %v637_v50 }
 0x199   : > { %v640_v54 = vadd.f32 %v639_v53, %v632_v52 }
 0x19b   : > { %641 = vst [vmem:[#allocation3] sm:$0x1] %v640_v54 }
 0x1a2   : > { %v1309_v57 = vld [vmem:[#allocation3] ss:$0 sm:$0xff] }
 0x1a3   : > { %v927_v58 = vmul.f32 %v2192_v56, %v1309_v57 }
 0x1ee   : > { %928 = vadd.xlane.f32.xlu1 %v927_v58 }
 0x207   : > { %v674_v59 = vpop.trf.xlu1 }
 0x208   : > { %1478 = vmatprep.mubr.msk.f32.mxu0 %vm690_vm1, %v674_v59 }
 0x20b   : > { %v675_v60 = vpop.trf.xlu1 }
 0x20c   : > { %1479 = vmatmul.mubr.msk.f32.vlgmr.msra.gmra.mxu0 %vm690_vm1, %v675_v60 }
 0x20d   : > { %1538 = vmatpush3.msra.mxu0 %v1034_v12 }
 0x20e   : > { %1539 = vmatprep.subr.mxu0 %v1910_v0 }
 0x20f   : > { %v676_v61 = vpop.trf.xlu1  ;;  %1540 = vmatpush3.msra.mxu0 %v1033_v13 }
 0x210   : > { %1481 = vmatprep.mubr.msk.f32.mxu0 %vm690_vm1, %v676_v61  ;;  %1541 = vmatprep.subr.mxu0 %v1910_v0 }
 0x211   : > { %1542 = vmatpush3.msra.mxu0 %v1032_v14 }
 0x212   : > { %1543 = vmatprep.subr.mxu0 %v1910_v0 }
 0x213   : > { %v677_v62 = vpop.trf.xlu1  ;;  %1544 = vmatpush3.msra.mxu0 %v1031_v15 }
 0x214   : > { %1482 = vmatmul.mubr.msk.f32.gmra.mxu0 %vm690_vm1, %v677_v62  ;;  %1545 = vmatprep.subr.mxu0 %v1910_v0 }
 0x215   : > { %1546 = vmatpush3.msra.mxu0 %v1030_v16 }
 0x216   : > { %1547 = vmatprep.subr.mxu0 %v1910_v0 }
 0x217   : > { %v678_v63 = vpop.trf.xlu1  ;;  %1548 = vmatpush3.msra.mxu0 %v1029_v17 }
 0x218   : > { %1484 = vmatprep.mubr.msk.f32.mxu0 %vm690_vm1, %v678_v63  ;;  %1549 = vmatprep.subr.mxu0 %v1910_v0 }
 0x219   : > { %1550 = vmatpush3.msra.mxu0 %v1028_v18 }
 0x21a   : > { %1551 = vmatprep.subr.mxu0 %v1910_v0 }
 0x21b   : > { %v679_v1 = vpop.trf.xlu1  ;;  %1552 = vmatpush3.msra.mxu0 %v1027_v19 }
 0x21c   : > { %1485 = vmatmul.mubr.msk.f32.gmra.mxu0 %vm690_vm1, %v679_v1  ;;  %1553 = vmatprep.subr.mxu0 %v1910_v0 }
 0x21d   : > { %1554 = vmatpush3.msra.mxu0 %v1026_v20 }
 0x21e   : > { %1555 = vmatprep.subr.mxu0 %v1910_v0 }
 0x21f   : > { %v680_v2 = vpop.trf.xlu1  ;;  %1556 = vmatpush3.msra.mxu0 %v1025_v21 }
 0x220   : > { %1487 = vmatprep.mubr.msk.f32.mxu0 %vm690_vm1, %v680_v2  ;;  %1557 = vmatprep.subr.mxu0 %v1910_v0 }
 0x221   : > { %1558 = vmatpush3.msra.mxu0 %v1024_v22 }
 0x222   : > { %1559 = vmatprep.subr.mxu0 %v1910_v0 }
 0x223   : > { %v681_v3 = vpop.trf.xlu1  ;;  %1560 = vmatpush3.msra.mxu0 %v1023_v23 }
 0x224   : > { %1488 = vmatmul.mubr.msk.f32.gmra.mxu0 %vm690_vm1, %v681_v3  ;;  %1561 = vmatprep.subr.mxu0 %v1910_v0 }
 0x225   : > { %1562 = vmatpush3.msra.mxu0 %v1022_v24 }
 0x226   : > { %1563 = vmatprep.subr.mxu0 %v1910_v0 }
 0x227   : > { %v682_v4 = vpop.trf.xlu1  ;;  %1564 = vmatpush3.msra.mxu0 %v1021_v25 }
 0x228   : > { %1490 = vmatprep.mubr.msk.f32.mxu0 %vm690_vm1, %v682_v4  ;;  %1565 = vmatprep.subr.mxu0 %v1910_v0 }
 0x229   : > { %1566 = vmatpush3.msra.mxu0 %v1020_v26 }
 0x22a   : > { %1567 = vmatprep.subr.mxu0 %v1910_v0 }
 0x22b   : > { %v683_v5 = vpop.trf.xlu1  ;;  %1568 = vmatpush3.msra.mxu0 %v1019_v43 }
 0x22c   : > { %1491 = vmatmul.mubr.msk.f32.gmra.mxu0 %vm690_vm1, %v683_v5 }
 0x22f   : > { %v684_v6 = vpop.trf.xlu1 }
 0x230   : > { %1493 = vmatprep.mubr.msk.f32.mxu0 %vm690_vm1, %v684_v6 }
 0x233   : > { %v685_v7 = vpop.trf.xlu1 }
 0x234   : > { %1494 = vmatmul.mubr.msk.f32.gmra.mxu0 %vm690_vm1, %v685_v7 }
 0x237   : > { %v686_v8 = vpop.trf.xlu1 }
 0x238   : > { %1496 = vmatprep.mubr.msk.f32.mxu0 %vm690_vm1, %v686_v8 }
 0x23b   : > { %v687_v9 = vpop.trf.xlu1 }
 0x23c   : > { %1497 = vmatmul.mubr.msk.f32.gmra.mxu0 %vm690_vm1, %v687_v9 }
 0x23f   : > { %v688_v10 = vpop.trf.xlu1 }
 0x240   : > { %1499 = vmatprep.mubr.msk.f32.mxu0 %vm690_vm1, %v688_v10 }
 0x243   : > { %v689_v11 = vpop.trf.xlu1 }
 0x244   : > { %1500 = vmatmul.mubr.msk.f32.gmra.mxu0 %vm690_vm1, %v689_v11 }
 0x245   : > { %1569 = vmatprep.mubr.msk.f32.mxu0 %vm1911_vm0, %v1910_v0 }
 0x277   : > { %v929_v44 = vpop.xlane.xlu1 %928 }
 0x278   : > { %v1016_v45 = vadd.f32 1e-08, %v929_v44 }
 0x27a   : > { %1675 = vrcp.f32 %v1016_v45 }
 0x287   : > { %v1676_v46 = vpop.eup %1675 }
 0x2cc   : > { %v1480_v27 = vpop.f32.mrf.mxu0 }
 0x2ce   : > { %v805_v28 = vpop.f32.mrf.mxu0 }
 0x2d4   : > { %v1483_v29 = vpop.f32.mrf.mxu0 }
 0x2d6   : > { %v815_v30 = vpop.f32.mrf.mxu0 }
 0x2dc   : > { %v1486_v31 = vpop.f32.mrf.mxu0 }
 0x2de   : > { %v825_v32 = vpop.f32.mrf.mxu0 }
 0x2e4   : > { %v1489_v33 = vpop.f32.mrf.mxu0 }
 0x2e6   : > { %v835_v34 = vpop.f32.mrf.mxu0 }
 0x2ec   : > { %v1492_v35 = vpop.f32.mrf.mxu0 }
 0x2ee   : > { %v845_v36 = vpop.f32.mrf.mxu0 }
 0x2f4   : > { %v1495_v37 = vpop.f32.mrf.mxu0 }
 0x2f6   : > { %v855_v38 = vpop.f32.mrf.mxu0 }
 0x2fc   : > { %v1498_v39 = vpop.f32.mrf.mxu0 }
 0x2fe   : > { %v865_v40 = vpop.f32.mrf.mxu0 }
 0x304   : > { %v1501_v41 = vpop.f32.mrf.mxu0 }
 0x305   : > { %1503 = vmatpush3.msra.mxu1 %v1501_v41 }
 0x306   : > { %v875_v42 = vpop.f32.mrf.mxu0  ;;  %1504 = vmatprep.subr.mxu1 %v1910_v0 }
 0x307   : > { %1505 = vmatpush3.msra.mxu1 %v875_v42 }
 0x308   : > { %1506 = vmatprep.subr.mxu1 %v1910_v0 }
 0x309   : > { %1507 = vmatpush3.msra.mxu1 %v1498_v39 }
 0x30a   : > { %1508 = vmatprep.subr.mxu1 %v1910_v0 }
 0x30b   : > { %1509 = vmatpush3.msra.mxu1 %v865_v40 }
 0x30c   : > { %1510 = vmatprep.subr.mxu1 %v1910_v0 }
 0x30d   : > { %1511 = vmatpush3.msra.mxu1 %v1495_v37 }
 0x30e   : > { %1512 = vmatprep.subr.mxu1 %v1910_v0 }
 0x30f   : > { %1513 = vmatpush3.msra.mxu1 %v855_v38 }
 0x310   : > { %1514 = vmatprep.subr.mxu1 %v1910_v0 }
 0x311   : > { %1515 = vmatpush3.msra.mxu1 %v1492_v35 }
 0x312   : > { %1516 = vmatprep.subr.mxu1 %v1910_v0 }
 0x313   : > { %1517 = vmatpush3.msra.mxu1 %v845_v36 }
 0x314   : > { %1518 = vmatprep.subr.mxu1 %v1910_v0 }
 0x315   : > { %1519 = vmatpush3.msra.mxu1 %v1489_v33 }
 0x316   : > { %1520 = vmatprep.subr.mxu1 %v1910_v0 }
 0x317   : > { %1521 = vmatpush3.msra.mxu1 %v835_v34 }
 0x318   : > { %1522 = vmatprep.subr.mxu1 %v1910_v0 }
 0x319   : > { %1523 = vmatpush3.msra.mxu1 %v1486_v31 }
 0x31a   : > { %1524 = vmatprep.subr.mxu1 %v1910_v0 }
 0x31b   : > { %1525 = vmatpush3.msra.mxu1 %v825_v32 }
 0x31c   : > { %1526 = vmatprep.subr.mxu1 %v1910_v0 }
 0x31d   : > { %1527 = vmatpush3.msra.mxu1 %v1483_v29 }
 0x31e   : > { %1528 = vmatprep.subr.mxu1 %v1910_v0 }
 0x31f   : > { %1529 = vmatpush3.msra.mxu1 %v815_v30 }
 0x320   : > { %1530 = vmatprep.subr.mxu1 %v1910_v0 }
 0x321   : > { %1531 = vmatpush3.msra.mxu1 %v1480_v27 }
 0x322   : > { %1532 = vmatprep.subr.mxu1 %v1910_v0 }
 0x323   : > { %1533 = vmatpush3.msra.mxu1 %v805_v28 }
 0x324   : > { %1535 = vmatmul.mubr.f32.vlgmr.msra.gmra.mxu1 %v2192_v56 }
 0x3e4   : > { %v1012_v47 = vpop.f32.mrf.mxu1 }
 0x3e5   : > { %v1018_v48 = vmul.f32 %v1676_v46, %v1012_v47 }
 0x3e6   : > { %v1536_v49 = vpop.f32.mrf.mxu1 }
 0x3e7   : > { %1570 = vmatmul.mubr.f32.vlgmr.msra.gmra.mxu0 %v1018_v48 }
 0x4a7   : > { %v1101_v0 = vpop.f32.mrf.mxu0 }
 0x4a8   : > { %1105 = vst [vmem:[%s404_s12] sm:$0xff] %v1101_v0 }
 0x4a9   : > { %v1571_v50 = vpop.f32.mrf.mxu0 }
 0x4aa   : > { %1826 = shalt.err (!%p1823_p6)
}
 0x4ab   : > { %s1827_s28 = scalar_lea.hbm %s2252_s9, 128  ;;  %s1831_s11 = scalar_lea.hbm %s2339_s3, 256 }
 0x4ac   : > { %p1828_p1 = scmp.ne.s32.totalorder %s2252_s9, %s1827_s28  ;;  %p1832_p10 = scmp.lt.s32.totalorder %s2252_s9, %s2339_s3 }
 0x4ad   : > { %p1833_p12 = scmp.lt.s32.totalorder %s1831_s11, %s1827_s28 }
 0x4ae   : > { %p1829_p2 = pnand %p1828_p1, %p2000_p8 }
 0x4af   : > { %p1834_p9 = por %p1833_p12, %p1832_p10 }
 0x4b0   : > { %p1830_p4 = pneg %p1829_p2 }
 0x4b2   : > { %p1835_p7 = pnand %p1834_p9, %p1830_p4 }
 0x4b4   : > { %1838 = shalt.err (!%p1835_p7)
}
 0x4b5   : > { %1586 = dma.vmem_to_hbm [thread:$0]  (%p2000_p8), %s2247_s13, 128, %s2252_s9, %s1107_s15  }
 0x4b6 PF: > { %s2340_s19 = sld [smem:[#allocation19_spill]]  ;;  %p2343_p11 = scmp.ge.s32.totalorder %s1901_s26, 2 }
 0x4b7   : > { %s2341_s20 = sld [smem:[#allocation20_spill]] }
 0x4bc   : > { %s1133_s17 = sand.u32 1, %s2340_s19  }
 0x4bd   : > { %p2342_p5 = scmp.ne.s32.totalorder %s2341_s20, 0  ;;  %s1134_s27 = scalar_lea.sflag [#allocation7], %s1133_s17 }
 0x4bf   : > { %p1606_p13 = pnand %p2343_p11, %p2342_p5 }
 0x4c1   : > { %p1607_p3 = pneg %p1606_p13 }
 0x4c3   : > { %1876 = dma.done.wait (%p1607_p3), %s1134_s27, 128  }
 0x4c4   : > { %1878 = vsyncadd (%p1607_p3), %s1134_s27, 4294967168  ;;  %s26_s26 = sadd.s32 1, %s1901_s26   ;;  %s2344_s8 = sld [smem:[#allocation22_spill]] }
 0x4c5   : > { %p23_p0 = scmp.ge.s32.totalorder %s26_s26, 4   ;;  %s2345_s7 = sld [smem:[#allocation21_spill]] }
 0x4c6   : > { %s2346_s21 = smov %s1885_s22  ;;  %s2347_s22 = smov %s1889_s23 }
 0x4c7   : > { %s2349_s24 = smov %s1897_s25  ;;  %25 = sbr.rel (!%p23_p0) target bundleno = 14 (0xe), region = 129 }
 0x4ca   : > { %s2348_s23 = smov %s2344_s8 }
 0x4cb   : > { %s2350_s25 = smov %s2345_s7 }
 0x4cc   :  { %1139 = vsyncpa [#allocation6], 1 }
 0x4cd   :  { %1141 = vsyncpa [#allocation6 + $0x1], 1 }
 0x4ce   :  { %1142 = vsyncpa [#allocation9], 1 }
 0x4cf   :  { %1144 = vsyncpa [#allocation9 + $0x1], 1 }
 0x4d0   :  { %1145 = vsyncpa [#allocation12], 1 }
 0x4d1   :  { %1146 = vsyncpa [#allocation7], 1 }
 0x4d2   :  { %1148 = vsyncpa [#allocation7 + $0x1], 1 }

</bundles_post_ra>
